<compile_context>
chip_gen: v5e
topology: v5e:2x2
jax: 0.10.0
libtpu: 0.0.40
codegen_flags: <defaults>
</compile_context>

<pallas_src>
import jax
import jax.numpy as jnp
from jax.experimental import pallas as pl
from jax.experimental.pallas import tpu as pltpu


def _round_up(x, m):
    return (x + m - 1) // m * m


def _pick_tile(dim, cap, step=128):
    """Largest multiple of `step` <= min(cap, dim) that divides dim (dim % step == 0)."""
    t = max(step, (min(cap, dim) // step) * step)
    while t > step and dim % t:
        t -= step
    return t


def _vmem_bytes(tm, h_pad, tk, tn):
    x_b = 2 * tm * h_pad * 2      # resident x (counted double-buffered), bf16
    w1_b = 2 * tk * tn * 2        # W1 slab, double-buffered, bf16
    acc_b = tm * tn * 4           # f32 accumulator scratch
    vec_b = 2 * 2 * tn * 4        # b1 / wr column tiles
    out_b = 2 * tm * 4            # per-j partial reward block
    return x_b + w1_b + acc_b + vec_b + out_b


def _make_kernel(tk):
    def reward_kernel(x_ref, w1_ref, b1_ref, wr_ref, out_ref, acc_ref):
        """One (batch-tile i, column-tile j, K-slab k) grid step.

        x_ref  : (tm, H_pad) bf16  masked last-token embeddings, VMEM-resident
        w1_ref : (tk, tn)    bf16  encoder weight block (K-slab x column tile)
        b1_ref : (1, tn)     f32   encoder bias columns
        wr_ref : (1, tn)     f32   reward-head weight columns
        out_ref: (1, tm, 1)  f32   partial reward for this column tile
        acc_ref: (tm, tn)    f32   accumulator, persists across the k axis
        """
        k = pl.program_id(2)

        @pl.when(k == 0)
        def _init():
            acc_ref[...] = jnp.zeros_like(acc_ref)

        # MXU: bf16 x bf16 -> f32 accumulate; x sliced in place (no per-k DMA).
        ks = pl.multiple_of(k * tk, tk)
        acc_ref[...] += jnp.dot(x_ref[:, pl.ds(ks, tk)], w1_ref[...],
                                preferred_element_type=jnp.float32)

        @pl.when(k == pl.num_programs(2) - 1)
        def _finalize():
            h = jnp.tanh(acc_ref[...] + b1_ref[...])                # (tm, tn) EUP/VPU
            # Reward-head partial: elementwise mul + lane reduce (VPU/XLU).
            r = jnp.sum(h * wr_ref[...], axis=-1, keepdims=True)    # (tm, 1)
            out_ref[0] = r

    return reward_kernel


def reward_model_forward(input_ids, attention_mask, prep):
    """input_ids (B, S) int32, attention_mask (B, S) -> reward (B, 1) float32."""
    B, _ = input_ids.shape
    H_pad = prep["w1"].shape[0]

    # ---- JAX glue (layout plumbing, fused under jit) ----------------------
    # TODO(synk): literal `[:, -1, :]` semantics — if the final position is padding
    #             the reward ignores sequence content; last-NON-padded-token
    #             selection (common reward-model convention) is not implemented.
    ids_last = input_ids[:, -1]                                     # (B,)
    emb_last = jnp.take(prep["embedding"], ids_last, axis=0)        # (B, H_pad) f32
    mask_last = attention_mask[:, -1:].astype(jnp.float32)          # (B, 1)
    x = (emb_last * mask_last).astype(jnp.bfloat16)                 # bf16 MXU operand

    # ---- tiling / padding ---------------------------------------------------
    B_pad = _round_up(max(B, 8), 8)
    if B_pad <= 256:
        tm = B_pad              # whole batch in one tile => W1 streamed exactly once
    else:
        tm = 256
        B_pad = _round_up(B_pad, tm)
    x = jnp.pad(x, ((0, B_pad - B), (0, 0)))

    tn = _pick_tile(H_pad, H_pad if H_pad < 256 else min(512, H_pad // 2))
    tk = _pick_tile(H_pad, 2048)
    budget = 40 * 1024 * 1024
    while _vmem_bytes(tm, H_pad, tk, tn) > budget and tk > 128:
        tk = _pick_tile(H_pad, tk // 2)
    while _vmem_bytes(tm, H_pad, tk, tn) > budget and tn > 128:
        tn = _pick_tile(H_pad, tn // 2)

    nb, nj, nk = B_pad // tm, H_pad // tn, H_pad // tk

    grid_spec = pltpu.PrefetchScalarGridSpec(
        num_scalar_prefetch=0,
        grid=(nb, nj, nk),
        in_specs=[
            pl.BlockSpec((tm, H_pad), lambda i, j, k: (i, 0)),   # x: resident over j,k
            pl.BlockSpec((tk, tn), lambda i, j, k: (k, j)),      # W1 K-slab x col-tile
            pl.BlockSpec((1, tn), lambda i, j, k: (0, j)),       # b1 columns
            pl.BlockSpec((1, tn), lambda i, j, k: (0, j)),       # wr columns
        ],
        out_specs=pl.BlockSpec((1, tm, 1), lambda i, j, k: (j, i, 0)),
        scratch_shapes=[pltpu.VMEM((tm, tn), jnp.float32)],
    )

    partials = pl.pallas_call(
        _make_kernel(tk),
        out_shape=jax.ShapeDtypeStruct((nj, B_pad, 1), jnp.float32),
        grid_spec=grid_spec,
        compiler_params=pltpu.CompilerParams(
            # i, j independent (megacore sharding: column tiles feed the 2nd TC
            # on v7x even when the whole batch is one tile); k is the reduction.
            dimension_semantics=("parallel", "parallel", "arbitrary"),
            vmem_limit_bytes=48 * 1024 * 1024,
        ),
    )(x, prep["w1"], prep["b1"], prep["wr"])

    # Tiny XLA reduce over column-tile partials + reward-head bias.
    return jnp.sum(partials, axis=0)[:B] + prep["br"]


def init_params(key, vocab_size, hidden_size):
    k_emb, k_w1, k_b1, k_wr, k_br = jax.random.split(key, 5)
    return {
        "embedding": jax.random.normal(k_emb, (vocab_size, hidden_size), jnp.float32) * 0.02,
        "w1": jax.random.normal(k_w1, (hidden_size, hidden_size), jnp.float32) * 0.05,
        "b1": jax.random.normal(k_b1, (1, hidden_size), jnp.float32) * 0.01,
        # reward_head = nn.Linear(hidden_size, 1): weight stored as its (1, H) row.
        "wr": jax.random.normal(k_wr, (1, hidden_size), jnp.float32) * 0.05,
        "br": jax.random.normal(k_br, (1, 1), jnp.float32) * 0.01,
    }


def prepare_params(params):
    """One-time prep: pad H up to a multiple of 128 and cast MXU operands to bf16.

    Zero padding is exact: padded x / W1 rows contribute 0 to the matmul and
    padded columns give tanh(0 + 0) * wr_pad(=0) = 0 in the reward dot.
    Doing this once keeps the per-call path free of the f32->bf16 W1 re-stream.
    """
    H = params["w1"].shape[0]
    H_pad = _round_up(max(H, 128), 128)
    ph = H_pad - H
    return {
        "embedding": jnp.pad(params["embedding"], ((0, 0), (0, ph))),
        "w1": jnp.pad(params["w1"], ((0, ph), (0, ph))).astype(jnp.bfloat16),
        "b1": jnp.pad(params["b1"], ((0, 0), (0, ph))),
        "wr": jnp.pad(params["wr"], ((0, 0), (0, ph))),
        "br": params["br"],
    }


if __name__ == "__main__":
    B, S, H, V = 2, 8, 32, 50

    key = jax.random.PRNGKey(0)
    k_params, k_ids = jax.random.split(key)

    params = init_params(k_params, V, H)
    prep = prepare_params(params)              # one-time bf16 cast + pad (NOT per call)
    forward = jax.jit(reward_model_forward)    # glue fuses / hoists under jit

    input_ids = jax.random.randint(k_ids, (B, S), 0, V, dtype=jnp.int32)
    # attention mask: second sequence has 2 trailing pad positions
    attention_mask = jnp.array(
        [[1] * S, [1] * (S - 2) + [0, 0]], dtype=jnp.int32
    )

    reward = forward(input_ids, attention_mask, prep)
    jax.block_until_ready(reward)

    assert reward.shape == (B, 1)
    assert reward.dtype == jnp.float32

    # Pure-JAX f32 reference of the same synthetic forward pass (bf16 tolerance).
    emb = jnp.take(params["embedding"], input_ids, axis=0)
    xr = emb * attention_mask.astype(jnp.float32)[..., None]
    h = jnp.tanh(xr @ params["w1"] + params["b1"])
    ref = h[:, -1, :] @ params["wr"].T + params["br"][0, 0]
    assert jnp.max(jnp.abs(reward - ref)) < 2e-2

    print("KERNEL_OK")
</pallas_src>

<mosaic_0001>
module attributes {stable_mosaic.version = 11 : i64} {
  func.func @reward_kernel(%arg0: i32, %arg1: i32, %arg2: i32, %arg3: memref<8x128xbf16, #tpu.memory_space<vmem>>, %arg4: memref<128x128xbf16, #tpu.memory_space<vmem>>, %arg5: memref<1x128xf32, #tpu.memory_space<vmem>>, %arg6: memref<1x128xf32, #tpu.memory_space<vmem>>, %arg7: memref<1x8x1xf32, #tpu.memory_space<vmem>>, %arg8: memref<8x128xf32, #tpu.memory_space<vmem>>) attributes {dimension_semantics = [#tpu.dimension_semantics<parallel>, #tpu.dimension_semantics<parallel>, #tpu.dimension_semantics<arbitrary>], iteration_bounds = array<i64: 1, 1, 1>, scalar_prefetch = 0 : i64, scratch_operands = 1 : i64, tpu.core_type = #tpu.core_type<tc>, window_params = [{transform_indices = @transform_0, window_bounds = array<i64: 8, 128>}, {transform_indices = @transform_1, window_bounds = array<i64: 128, 128>}, {transform_indices = @transform_2, window_bounds = array<i64: 1, 128>}, {transform_indices = @transform_3, window_bounds = array<i64: 1, 128>}, {transform_indices = @transform_4, window_bounds = array<i64: 1, 8, 1>}]} {
    %c0_i32 = arith.constant 0 : i32
    %0 = arith.cmpi eq, %arg2, %c0_i32 : i32
    %1 = arith.extui %0 : i1 to i32
    %c0_i32_0 = arith.constant 0 : i32
    %2 = arith.cmpi ne, %1, %c0_i32_0 : i32
    scf.if %2 {
      %cst_9 = arith.constant 0.000000e+00 : f32
      %15 = vector.broadcast %cst_9 : f32 to vector<8x128xf32>
      %c0_10 = arith.constant 0 : index
      %c0_11 = arith.constant 0 : index
      %16 = vector.load %arg8[%c0_10, %c0_11] : memref<8x128xf32, #tpu.memory_space<vmem>>, vector<8x128xf32>
      tpu.vector_store %arg8[%c0_10, %c0_11], %15 {strides = array<i32>} : memref<8x128xf32, #tpu.memory_space<vmem>>, vector<8x128xf32>,
    } else {
    }
    %c128_i32 = arith.constant 128 : i32
    %3 = arith.muli %arg2, %c128_i32 : i32
    %4 = tpu.assume_multiple %3, 128 : i32
    %c0 = arith.constant 0 : index
    %c0_1 = arith.constant 0 : index
    %5 = vector.load %arg8[%c0, %c0_1] : memref<8x128xf32, #tpu.memory_space<vmem>>, vector<8x128xf32>
    %c0_2 = arith.constant 0 : index
    %6 = arith.index_cast %4 : i32 to index
    %7 = vector.load %arg3[%c0_2, %6] : memref<8x128xbf16, #tpu.memory_space<vmem>>, vector<8x128xbf16>
    %c0_3 = arith.constant 0 : index
    %c0_4 = arith.constant 0 : index
    %8 = vector.load %arg4[%c0_3, %c0_4] : memref<128x128xbf16, #tpu.memory_space<vmem>>, vector<128x128xbf16>
    %cst = arith.constant dense<0.000000e+00> : vector<8x128xf32>
    %9 = tpu.matmul %7, %8, %cst {dimension_numbers = #tpu.dot_dimension_numbers<[1], [0], [0], [1], [0, 0, 1, 1], [], []>} : vector<8x128xbf16>, vector<128x128xbf16>, vector<8x128xf32> -> vector<8x128xf32>
    %10 = arith.addf %5, %9 : vector<8x128xf32>
    %c0_5 = arith.constant 0 : index
    %c0_6 = arith.constant 0 : index
    %11 = vector.load %arg8[%c0_5, %c0_6] : memref<8x128xf32, #tpu.memory_space<vmem>>, vector<8x128xf32>
    tpu.vector_store %arg8[%c0_5, %c0_6], %10 {strides = array<i32>} : memref<8x128xf32, #tpu.memory_space<vmem>>, vector<8x128xf32>,
    %c0_i32_7 = arith.constant 0 : i32
    %12 = arith.cmpi eq, %arg2, %c0_i32_7 : i32
    %13 = arith.extui %12 : i1 to i32
    %c0_i32_8 = arith.constant 0 : i32
    %14 = arith.cmpi ne, %13, %c0_i32_8 : i32
    scf.if %14 {
      %c0_9 = arith.constant 0 : index
      %c0_10 = arith.constant 0 : index
      %15 = vector.load %arg8[%c0_9, %c0_10] : memref<8x128xf32, #tpu.memory_space<vmem>>, vector<8x128xf32>
      %c0_11 = arith.constant 0 : index
      %c0_12 = arith.constant 0 : index
      %16 = vector.load %arg5[%c0_11, %c0_12] : memref<1x128xf32, #tpu.memory_space<vmem>>, vector<1x128xf32>
      %17 = vector.broadcast %16 : vector<1x128xf32> to vector<8x128xf32>
      %18 = arith.addf %15, %17 : vector<8x128xf32>
      %19 = math.tanh %18 : vector<8x128xf32>
      %c0_13 = arith.constant 0 : index
      %c0_14 = arith.constant 0 : index
      %20 = vector.load %arg6[%c0_13, %c0_14] : memref<1x128xf32, #tpu.memory_space<vmem>>, vector<1x128xf32>
      %21 = vector.broadcast %20 : vector<1x128xf32> to vector<8x128xf32>
      %22 = arith.mulf %19, %21 : vector<8x128xf32>
      %cst_15 = arith.constant dense<0.000000e+00> : vector<8xf32>
      %23 = vector.multi_reduction <add>, %22, %cst_15 [1] : vector<8x128xf32> to vector<8xf32>
      %24 = vector.shape_cast %23 : vector<8xf32> to vector<8x1xf32>
      %c0_16 = arith.constant 0 : index
      %c0_17 = arith.constant 0 : index
      %c0_18 = arith.constant 0 : index
      %25 = vector.load %arg7[%c0_16, %c0_17, %c0_18] : memref<1x8x1xf32, #tpu.memory_space<vmem>>, vector<1x8x1xf32>
      %26 = vector.shape_cast %25 : vector<1x8x1xf32> to vector<8x1xf32>
      %27 = vector.shape_cast %24 : vector<8x1xf32> to vector<1x8x1xf32>
      tpu.vector_store %arg7[%c0_16, %c0_17, %c0_18], %27 {strides = array<i32>} : memref<1x8x1xf32, #tpu.memory_space<vmem>>, vector<1x8x1xf32>,
    } else {
    }
    return
  }
  func.func @transform_0(%arg0: i32, %arg1: i32, %arg2: i32) -> (i32, i32) {
    %c0_i32 = arith.constant 0 : i32
    %c0_i32_0 = arith.constant 0 : i32
    return %arg0, %c0_i32 : i32, i32
  }
  func.func @transform_1(%arg0: i32, %arg1: i32, %arg2: i32) -> (i32, i32) {
    %c0_i32 = arith.constant 0 : i32
    return %arg2, %arg1 : i32, i32
  }
  func.func @transform_2(%arg0: i32, %arg1: i32, %arg2: i32) -> (i32, i32) {
    %c0_i32 = arith.constant 0 : i32
    %c0_i32_0 = arith.constant 0 : i32
    return %c0_i32, %arg1 : i32, i32
  }
  func.func @transform_3(%arg0: i32, %arg1: i32, %arg2: i32) -> (i32, i32) {
    %c0_i32 = arith.constant 0 : i32
    %c0_i32_0 = arith.constant 0 : i32
    return %c0_i32, %arg1 : i32, i32
  }
  func.func @transform_4(%arg0: i32, %arg1: i32, %arg2: i32) -> (i32, i32, i32) {
    %c0_i32 = arith.constant 0 : i32
    %c0_i32_0 = arith.constant 0 : i32
    return %arg1, %arg0, %c0_i32 : i32, i32, i32
  }
}

</mosaic_0001>

<bundles_post_ra>
// kernel: reward_model_forward.1
= control target key start
LH: loop header
LB: loop body
LE: loop exit
PB: predicated region body
PF: predicated region fallthrough
CT: control target
= control target key end

     0   :  { %9 = vsyncpa [#allocation4], 0  ;;  %s223_s18 = smov [#allocation3]   ;;  %s224_s20 = smov 64   ;;  %s266_s0 = inlined_call_operand.vmem [shape: bf16[8,128], index: 0, kind: input, shape index: {}]   ;;  %s267_s1 = inlined_call_operand.hbm [shape: bf16[128,128], index: 1, kind: input, shape index: {}]   ;;  %s268_s2 = inlined_call_operand.vmem [shape: f32[1,128], index: 2, kind: input, shape index: {}]   ;;  %s269_s3 = inlined_call_operand.vmem [shape: f32[1,128], index: 3, kind: input, shape index: {}]   ;;  %s270_s4 = inlined_call_operand.vmem [shape: f32[1,8,1], index: 4, kind: output, shape index: {}]  }
   0x1   :  { %s16_s17 = sshll.u32 %s267_s1, 4  ;;  %s18_s19 = sshll.u32 %s223_s18, 4  ;;  %s17_s17 = int_to_ptr.hbm [resolvable:$true] %s16_s17  ;;  %s19_s19 = int_to_ptr.vmem [resolvable:$true] %s18_s19 }
   0x2   :  { %s225_s21 = smov 4  }
   0x3   :  { %24 = dma.hbm_to_vmem [thread:$0]  %s17_s17, 1024, %s19_s19, [#allocation4], %s224_s20, %s224_s20, %s225_s21  }
   0x4   :  { %221 = dma.done.wait [#allocation4], 1024  }
   0x5   :  { %222 = vsyncadd [#allocation4], 4294966272  ;;  %v189_v0 = vld [vmem:[#allocation3 + $0x38] sm:$0xff]  ;;  %v188_v1 = vld [vmem:[#allocation3 + $0x30] sm:$0xff]  ;;  %vm141_vm0 = vcmask 7168  }
   0x6   :  { %109 = vmatpush.bf16.msra.mxu0 %v189_v0  ;;  %v187_v2 = vld [vmem:[#allocation3 + $0x28] sm:$0xff]  ;;  %v186_v3 = vld [vmem:[#allocation3 + $0x20] sm:$0xff]  ;;  %v185_v4 = vld [vmem:[#allocation3 + $0x18] sm:$0xff] }
   0x7   :  { %v184_v5 = vld [vmem:[#allocation3 + $0x10] sm:$0xff]  ;;  %v183_v6 = vld [vmem:[#allocation3 + $0x8] sm:$0xff]  ;;  %v182_v7 = vld [vmem:[#allocation3] sm:$0xff] }
   0x8   :  { %v44_v8 = vld [vmem:[%s266_s0] sm:$0xf] }
   0x9   :  { %v193_v9 = vld [vmem:[%s268_s2] ss:$0 sm:$0xff] }
   0xa   :  { %110 = vmatpush.bf16.msra.mxu0 %v188_v1  ;;  %v194_v12 = vld [vmem:[%s269_s3] ss:$0 sm:$0xff] }
   0xe   :  { %111 = vmatpush.bf16.msra.mxu0 %v187_v2 }
  0x12   :  { %112 = vmatpush.bf16.msra.mxu0 %v186_v3 }
  0x16   :  { %113 = vmatpush.bf16.msra.mxu0 %v185_v4 }
  0x1a   :  { %114 = vmatpush.bf16.msra.mxu0 %v184_v5 }
  0x1e   :  { %115 = vmatpush.bf16.msra.mxu0 %v183_v6 }
  0x22   :  { %116 = vmatpush.bf16.msra.mxu0 %v182_v7 }
  0x25   :  { %117 = vmatmul.bf16.vlgmr.msra.gmra.mxu0 %v44_v8 }
  0xa2   :  { %v118_v10 = vpop.f32.mrf.mxu0 }
  0xa3   :  { %v132_v11 = vadd.f32 %v193_v9, %v118_v10 }
  0xa5   :  { %195 = vtanh.f32 %v132_v11 }
  0xaa   :  { %v120_v13 = vpop.f32.mrf.mxu0 }
  0xab   :  { %v196_v14 = vpop.eup %195 }
  0xac   :  { %v138_v15 = vmul.f32 %v196_v14, %v194_v12 }
  0xae   :  { %139 = vadd.xlane.f32.xlu0 %v138_v15 }
 0x121   :  { %v140_v16 = vpop.xlane.xlu0 %139 }
 0x122   :  { %142 = vst.msk [vmem:[%s270_s4] sm:$0xff] %vm141_vm0, %v140_v16 }
 0x123   :  { %147 = vsyncpa [#allocation4], 1 }

</bundles_post_ra>
